<compile_context>
chip_gen: v6e
topology: v6e:2x2x1
jax: 0.10.0
libtpu: 0.0.40
codegen_flags: <defaults>
</compile_context>

<pallas_src>
import jax
import jax.numpy as jnp
from jax.experimental import pallas as pl
from jax.experimental.pallas import tpu as pltpu

LANE = 128


def _round_up(n, m):
    return ((n + m - 1) // m) * m


# -----------------------------------------------------------------------------
# Kernel: fused 3-layer MLP + softmax over one batch tile. All feature dims are
# pre-padded to 128 lanes, so every intermediate vreg is fully populated and the
# output store is an unmasked lane-dense (tb, 128) slab.
# -----------------------------------------------------------------------------
def simplenet_kernel(x_ref, w1_ref, b1_ref, w2_ref, b2_ref, w3_ref, b3_ref, o_ref):
    # x tile may arrive as f32 or bf16 (wrapper folds the cast into the batch
    # pad when one is needed); MXU operands are bf16, accumulation is f32.
    x = x_ref[...].astype(jnp.bfloat16)

    # fc1 + sigmoid (padded lanes -> sigmoid(0)=0.5; never leaks: padded W rows are 0)
    h1 = jnp.dot(x, w1_ref[...], preferred_element_type=jnp.float32) + b1_ref[...]
    h1 = jax.nn.sigmoid(h1)

    # fc2 + sigmoid
    h2 = jnp.dot(h1.astype(jnp.bfloat16), w2_ref[...],
                 preferred_element_type=jnp.float32) + b2_ref[...]
    h2 = jax.nn.sigmoid(h2)

    # fc3: padded output columns carry a -1e30 bias -> exp underflows to exactly
    # 0 in f32, so the softmax normalization only sees the real logits.
    logits = jnp.dot(h2.astype(jnp.bfloat16), w3_ref[...],
                     preferred_element_type=jnp.float32) + b3_ref[...]

    # numerically stable softmax over the padded, lane-dense feature axis
    m = jnp.max(logits, axis=-1, keepdims=True)
    e = jnp.exp(logits - m)
    denom = jnp.sum(e, axis=-1, keepdims=True)
    o_ref[...] = (e * pl.reciprocal(denom, approx=True)).astype(o_ref.dtype)


# -----------------------------------------------------------------------------
# One-time parameter preparation (hoisted out of the hot path).
# -----------------------------------------------------------------------------
def prepare_params(w1, b1, w2, b2, w3, b3):
    """Pad feature dims to 128 lanes and pre-cast weights to bf16.

    Call once per model and reuse; keeps the per-call path to one pallas_call.
    w_i are (fan_in, fan_out) (transposed vs. PyTorch nn.Linear.weight).
    Returns (prepared_params_tuple, out_size).
    """
    in_size, hidden = w1.shape
    out_size = w3.shape[1]
    hp = max(LANE, _round_up(hidden, LANE))    # padded hidden width
    op = max(LANE, _round_up(out_size, LANE))  # padded output width

    w1p = jnp.zeros((in_size, hp), jnp.bfloat16).at[:, :hidden].set(w1.astype(jnp.bfloat16))
    b1p = jnp.zeros((1, hp), jnp.float32).at[:, :hidden].set(b1.reshape(1, -1))
    w2p = jnp.zeros((hp, hp), jnp.bfloat16).at[:hidden, :hidden].set(w2.astype(jnp.bfloat16))
    b2p = jnp.zeros((1, hp), jnp.float32).at[:, :hidden].set(b2.reshape(1, -1))
    w3p = jnp.zeros((hp, op), jnp.bfloat16).at[:hidden, :out_size].set(w3.astype(jnp.bfloat16))
    # bias in padded fc3 lanes is -1e30: keeps softmax of padded columns at 0
    # (requires f32 bias + f32 accumulation -- do not move this path to bf16).
    b3p = jnp.full((1, op), -1e30, jnp.float32).at[:, :out_size].set(b3.reshape(1, -1))
    return (w1p, b1p, w2p, b2p, w3p, b3p), out_size


# -----------------------------------------------------------------------------
# Batch-tile selection per TPU generation.
# -----------------------------------------------------------------------------
def _num_tensorcores_per_chip():
    # v7x has 2 TensorCores/chip; splitting the "parallel" batch axis across
    # them is the only v7x-specific lever for this kernel. v5e/v6e: grid is a
    # serial loop, so a single big tile minimizes per-step overhead.
    try:
        kind = jax.devices()[0].device_kind.lower()
        if "v7" in kind:
            return 2
    except Exception:
        pass
    return 1


def _pick_batch_tile(B, n_cores):
    MAX_TB = 4096  # double-buffered (tb,32) x + (tb,128) out stays far under VMEM
    tb = -(-B // n_cores)          # cdiv: aim for one tile per TensorCore
    tb = _round_up(tb, 8)          # sublane alignment
    if tb >= 256:
        tb = _round_up(tb, 256)    # full 256-row MXU passes on v6e/v7x
    return min(tb, MAX_TB)


# -----------------------------------------------------------------------------
# Forward pass.
# -----------------------------------------------------------------------------
def simplenet_forward_padded(x, prepared, *, batch_tile=None):
    """Fused forward. Returns the lane-dense padded (Bp, 128) probability slab;
    real probabilities live in [:B, :out_size]. Returning the padded slab avoids
    an extra HBM slice pass; slice lazily / fuse into the consumer when possible.
    """
    w1p, b1p, w2p, b2p, w3p, b3p = prepared
    B, in_size = x.shape
    hp = w1p.shape[1]
    op = w3p.shape[1]

    tb = batch_tile if batch_tile is not None else _pick_batch_tile(
        B, _num_tensorcores_per_chip())
    n_tiles = pl.cdiv(B, tb)
    Bp = n_tiles * tb

    if Bp != B:
        # Fold the bf16 cast into the (already required) pad pass: halves x DMA.
        xp = jnp.pad(x, ((0, Bp - B), (0, 0))).astype(jnp.bfloat16)
    else:
        xp = x  # no pad needed -> avoid a standalone cast pass; kernel casts.

    resident = lambda shape: pl.BlockSpec(shape, lambda i: (0, 0))  # VMEM-resident

    grid_spec = pl.GridSpec(
        grid=(n_tiles,),
        in_specs=[
            pl.BlockSpec((tb, in_size), lambda i: (i, 0)),  # x tile per step
            resident((in_size, hp)),                        # w1
            resident((1, hp)),                              # b1
            resident((hp, hp)),                             # w2
            resident((1, hp)),                              # b2
            resident((hp, op)),                             # w3
            resident((1, op)),                              # b3
        ],
        out_specs=pl.BlockSpec((tb, op), lambda i: (i, 0)),
    )

    return pl.pallas_call(
        simplenet_kernel,
        out_shape=jax.ShapeDtypeStruct((Bp, op), jnp.float32),
        grid_spec=grid_spec,
        compiler_params=pltpu.CompilerParams(dimension_semantics=("parallel",)),
    )(xp, w1p, b1p, w2p, b2p, w3p, b3p)


def simplenet_forward(x, prepared, out_size, *, batch_tile=None):
    """Convenience wrapper matching the PyTorch output shape (B, out_size).
    Note: the trailing slice is an extra HBM pass; prefer the padded variant."""
    out = simplenet_forward_padded(x, prepared, batch_tile=batch_tile)
    return out[: x.shape[0], :out_size]


def init_params(key, input_size, hidden_size, output_size):
    # Deterministic init mimicking nn.Linear's uniform(-1/sqrt(fan_in), 1/sqrt(fan_in)).
    ks = jax.random.split(key, 6)

    def lin(kw, kb, fan_in, fan_out):
        bound = 1.0 / jnp.sqrt(jnp.float32(fan_in))
        w = jax.random.uniform(kw, (fan_in, fan_out), jnp.float32, -bound, bound)
        b = jax.random.uniform(kb, (fan_out,), jnp.float32, -bound, bound)
        return w, b

    w1, b1 = lin(ks[0], ks[1], input_size, hidden_size)
    w2, b2 = lin(ks[2], ks[3], hidden_size, hidden_size)
    w3, b3 = lin(ks[4], ks[5], hidden_size, output_size)
    return w1, b1, w2, b2, w3, b3


if __name__ == "__main__":
    input_size, hidden_size, output_size = 32, 32, 16
    batch = 64  # small; 1 tile on v5e/v6e, 2x 32-row tiles on v7x

    key = jax.random.PRNGKey(0)
    kx, kp = jax.random.split(key)
    x = jax.random.normal(kx, (batch, input_size), jnp.float32)
    w1, b1, w2, b2, w3, b3 = init_params(kp, input_size, hidden_size, output_size)

    # One-time parameter prep (padding + bf16 cast) -- NOT in the per-call path.
    prepared, out_size = prepare_params(w1, b1, w2, b2, w3, b3)

    fwd = jax.jit(simplenet_forward_padded)
    out_padded = jax.block_until_ready(fwd(x, prepared))

    # Slice to the PyTorch-shaped output only for verification here.
    out = out_padded[:batch, :out_size]

    # Sanity check vs. pure-f32 JAX reference (bf16 MXU operands + approx
    # reciprocal in the kernel -> looser tolerance than f32-exact).
    h = jax.nn.sigmoid(x @ w1 + b1)
    h = jax.nn.sigmoid(h @ w2 + b2)
    ref = jax.nn.softmax(h @ w3 + b3, axis=1)

    assert out.shape == (batch, output_size), out.shape
    assert jnp.allclose(out, ref, atol=2e-2, rtol=2e-2), "mismatch vs reference"
    assert jnp.allclose(jnp.sum(out, axis=1), 1.0, atol=1e-2)

    print("KERNEL_OK")
</pallas_src>

<mosaic_0001>
module attributes {stable_mosaic.version = 11 : i64} {
  func.func @simplenet_kernel(%arg0: i32, %arg1: memref<64x32xf32, #tpu.memory_space<vmem>>, %arg2: memref<32x128xbf16, #tpu.memory_space<vmem>>, %arg3: memref<1x128xf32, #tpu.memory_space<vmem>>, %arg4: memref<128x128xbf16, #tpu.memory_space<vmem>>, %arg5: memref<1x128xf32, #tpu.memory_space<vmem>>, %arg6: memref<128x128xbf16, #tpu.memory_space<vmem>>, %arg7: memref<1x128xf32, #tpu.memory_space<vmem>>, %arg8: memref<64x128xf32, #tpu.memory_space<vmem>>) attributes {dimension_semantics = [#tpu.dimension_semantics<parallel>], iteration_bounds = array<i64: 1>, scalar_prefetch = 0 : i64, scratch_operands = 0 : i64, tpu.core_type = #tpu.core_type<tc>, window_params = [{transform_indices = @transform_0, window_bounds = array<i64: 64, 32>}, {pipeline_mode = #tpu.pipeline_mode<synchronous>, transform_indices = @transform_1, window_bounds = array<i64: 32, 128>}, {pipeline_mode = #tpu.pipeline_mode<synchronous>, transform_indices = @transform_2, window_bounds = array<i64: 1, 128>}, {pipeline_mode = #tpu.pipeline_mode<synchronous>, transform_indices = @transform_3, window_bounds = array<i64: 128, 128>}, {pipeline_mode = #tpu.pipeline_mode<synchronous>, transform_indices = @transform_4, window_bounds = array<i64: 1, 128>}, {pipeline_mode = #tpu.pipeline_mode<synchronous>, transform_indices = @transform_5, window_bounds = array<i64: 128, 128>}, {pipeline_mode = #tpu.pipeline_mode<synchronous>, transform_indices = @transform_6, window_bounds = array<i64: 1, 128>}, {transform_indices = @transform_7, window_bounds = array<i64: 64, 128>}]} {
    %c0 = arith.constant 0 : index
    %c0_0 = arith.constant 0 : index
    %0 = vector.load %arg1[%c0, %c0_0] : memref<64x32xf32, #tpu.memory_space<vmem>>, vector<64x32xf32>
    %1 = arith.truncf %0 : vector<64x32xf32> to vector<64x32xbf16>
    %c0_1 = arith.constant 0 : index
    %c0_2 = arith.constant 0 : index
    %2 = vector.load %arg2[%c0_1, %c0_2] : memref<32x128xbf16, #tpu.memory_space<vmem>>, vector<32x128xbf16>
    %cst = arith.constant dense<0.000000e+00> : vector<64x128xf32>
    %3 = tpu.matmul %1, %2, %cst {dimension_numbers = #tpu.dot_dimension_numbers<[1], [0], [0], [1], [0, 0, 1, 1], [], []>} : vector<64x32xbf16>, vector<32x128xbf16>, vector<64x128xf32> -> vector<64x128xf32>
    %c0_3 = arith.constant 0 : index
    %c0_4 = arith.constant 0 : index
    %4 = vector.load %arg3[%c0_3, %c0_4] : memref<1x128xf32, #tpu.memory_space<vmem>>, vector<1x128xf32>
    %5 = vector.broadcast %4 : vector<1x128xf32> to vector<64x128xf32>
    %6 = arith.addf %3, %5 : vector<64x128xf32>
    %7 = arith.negf %6 : vector<64x128xf32>
    %8 = math.exp %7 : vector<64x128xf32>
    %cst_5 = arith.constant 1.000000e+00 : f32
    %9 = vector.broadcast %cst_5 : f32 to vector<64x128xf32>
    %10 = arith.addf %9, %8 : vector<64x128xf32>
    %11 = arith.divf %9, %10 : vector<64x128xf32>
    %12 = arith.truncf %11 : vector<64x128xf32> to vector<64x128xbf16>
    %c0_6 = arith.constant 0 : index
    %c0_7 = arith.constant 0 : index
    %13 = vector.load %arg4[%c0_6, %c0_7] : memref<128x128xbf16, #tpu.memory_space<vmem>>, vector<128x128xbf16>
    %cst_8 = arith.constant dense<0.000000e+00> : vector<64x128xf32>
    %14 = tpu.matmul %12, %13, %cst_8 {dimension_numbers = #tpu.dot_dimension_numbers<[1], [0], [0], [1], [0, 0, 1, 1], [], []>} : vector<64x128xbf16>, vector<128x128xbf16>, vector<64x128xf32> -> vector<64x128xf32>
    %c0_9 = arith.constant 0 : index
    %c0_10 = arith.constant 0 : index
    %15 = vector.load %arg5[%c0_9, %c0_10] : memref<1x128xf32, #tpu.memory_space<vmem>>, vector<1x128xf32>
    %16 = vector.broadcast %15 : vector<1x128xf32> to vector<64x128xf32>
    %17 = arith.addf %14, %16 : vector<64x128xf32>
    %18 = arith.negf %17 : vector<64x128xf32>
    %19 = math.exp %18 : vector<64x128xf32>
    %cst_11 = arith.constant 1.000000e+00 : f32
    %20 = vector.broadcast %cst_11 : f32 to vector<64x128xf32>
    %21 = arith.addf %20, %19 : vector<64x128xf32>
    %22 = arith.divf %20, %21 : vector<64x128xf32>
    %23 = arith.truncf %22 : vector<64x128xf32> to vector<64x128xbf16>
    %c0_12 = arith.constant 0 : index
    %c0_13 = arith.constant 0 : index
    %24 = vector.load %arg6[%c0_12, %c0_13] : memref<128x128xbf16, #tpu.memory_space<vmem>>, vector<128x128xbf16>
    %cst_14 = arith.constant dense<0.000000e+00> : vector<64x128xf32>
    %25 = tpu.matmul %23, %24, %cst_14 {dimension_numbers = #tpu.dot_dimension_numbers<[1], [0], [0], [1], [0, 0, 1, 1], [], []>} : vector<64x128xbf16>, vector<128x128xbf16>, vector<64x128xf32> -> vector<64x128xf32>
    %c0_15 = arith.constant 0 : index
    %c0_16 = arith.constant 0 : index
    %26 = vector.load %arg7[%c0_15, %c0_16] : memref<1x128xf32, #tpu.memory_space<vmem>>, vector<1x128xf32>
    %27 = vector.broadcast %26 : vector<1x128xf32> to vector<64x128xf32>
    %28 = arith.addf %25, %27 : vector<64x128xf32>
    %cst_17 = arith.constant dense<0xFF800000> : vector<64xf32>
    %29 = vector.multi_reduction <maximumf>, %28, %cst_17 [1] : vector<64x128xf32> to vector<64xf32>
    %30 = vector.shape_cast %29 : vector<64xf32> to vector<64x1xf32>
    %31 = vector.broadcast %30 : vector<64x1xf32> to vector<64x128xf32>
    %32 = arith.subf %28, %31 : vector<64x128xf32>
    %33 = math.exp %32 : vector<64x128xf32>
    %cst_18 = arith.constant dense<0.000000e+00> : vector<64xf32>
    %34 = vector.multi_reduction <add>, %33, %cst_18 [1] : vector<64x128xf32> to vector<64xf32>
    %35 = vector.shape_cast %34 : vector<64xf32> to vector<64x1xf32>
    %36 = tpu.reciprocal %35 {approx = true} : vector<64x1xf32> -> vector<64x1xf32>
    %37 = vector.broadcast %36 : vector<64x1xf32> to vector<64x128xf32>
    %38 = arith.mulf %33, %37 : vector<64x128xf32>
    %c0_19 = arith.constant 0 : index
    %c0_20 = arith.constant 0 : index
    %39 = vector.load %arg8[%c0_19, %c0_20] : memref<64x128xf32, #tpu.memory_space<vmem>>, vector<64x128xf32>
    tpu.vector_store %arg8[%c0_19, %c0_20], %38 {strides = array<i32>} : memref<64x128xf32, #tpu.memory_space<vmem>>, vector<64x128xf32>,
    return
  }
  func.func @transform_0(%arg0: i32) -> (i32, i32) {
    %c0_i32 = arith.constant 0 : i32
    %c0_i32_0 = arith.constant 0 : i32
    return %arg0, %c0_i32 : i32, i32
  }
  func.func @transform_1(%arg0: i32) -> (i32, i32) {
    %c0_i32 = arith.constant 0 : i32
    %c0_i32_0 = arith.constant 0 : i32
    %c0_i32_1 = arith.constant 0 : i32
    return %c0_i32, %c0_i32_0 : i32, i32
  }
  func.func @transform_2(%arg0: i32) -> (i32, i32) {
    %c0_i32 = arith.constant 0 : i32
    %c0_i32_0 = arith.constant 0 : i32
    %c0_i32_1 = arith.constant 0 : i32
    return %c0_i32, %c0_i32_0 : i32, i32
  }
  func.func @transform_3(%arg0: i32) -> (i32, i32) {
    %c0_i32 = arith.constant 0 : i32
    %c0_i32_0 = arith.constant 0 : i32
    %c0_i32_1 = arith.constant 0 : i32
    return %c0_i32, %c0_i32_0 : i32, i32
  }
  func.func @transform_4(%arg0: i32) -> (i32, i32) {
    %c0_i32 = arith.constant 0 : i32
    %c0_i32_0 = arith.constant 0 : i32
    %c0_i32_1 = arith.constant 0 : i32
    return %c0_i32, %c0_i32_0 : i32, i32
  }
  func.func @transform_5(%arg0: i32) -> (i32, i32) {
    %c0_i32 = arith.constant 0 : i32
    %c0_i32_0 = arith.constant 0 : i32
    %c0_i32_1 = arith.constant 0 : i32
    return %c0_i32, %c0_i32_0 : i32, i32
  }
  func.func @transform_6(%arg0: i32) -> (i32, i32) {
    %c0_i32 = arith.constant 0 : i32
    %c0_i32_0 = arith.constant 0 : i32
    %c0_i32_1 = arith.constant 0 : i32
    return %c0_i32, %c0_i32_0 : i32, i32
  }
  func.func @transform_7(%arg0: i32) -> (i32, i32) {
    %c0_i32 = arith.constant 0 : i32
    %c0_i32_0 = arith.constant 0 : i32
    return %arg0, %c0_i32 : i32, i32
  }
}

</mosaic_0001>

<bundles_post_ra>
// kernel: simplenet_forward_padded.1
= control target key start
LH: loop header
LB: loop body
LE: loop exit
PB: predicated region body
PF: predicated region fallthrough
CT: control target
= control target key end

     0   :  { %12 = vsyncpa [#allocation3], 0  ;;  %s1042_s0 = inlined_call_operand.vmem [shape: f32[64,32], index: 0, kind: input, shape index: {}]   ;;  %s1043_s1 = inlined_call_operand.vmem [shape: bf16[32,128], index: 1, kind: input, shape index: {}]   ;;  %s1044_s2 = inlined_call_operand.vmem [shape: f32[1,128], index: 2, kind: input, shape index: {}]   ;;  %s1045_s3 = inlined_call_operand.vmem [shape: bf16[128,128], index: 3, kind: input, shape index: {}]   ;;  %s1046_s4 = inlined_call_operand.vmem [shape: f32[1,128], index: 4, kind: input, shape index: {}]   ;;  %s1047_s5 = inlined_call_operand.hbm [shape: bf16[128,128], index: 5, kind: input, shape index: {}]   ;;  %s1048_s6 = inlined_call_operand.vmem [shape: f32[1,128], index: 6, kind: input, shape index: {}]   ;;  %s1049_s7 = inlined_call_operand.hbm [shape: f32[64,128], index: 7, kind: output, shape index: {}]  }
   0x1   :  { %13 = vsyncpa [#allocation4], 0  ;;  %s923_s24 = smov [#allocation2]  }
   0x2   :  { %s29_s25 = sshll.u32 %s923_s24, 4  ;;  %s30_s25 = int_to_ptr.vmem [resolvable:$true] %s29_s25 }
   0x3   :  { %s887_s26 = scalar_lea.vmem %s30_s25, 1024  ;;  %p892_p1 = scmp.lt.s32.totalorder %s30_s25, %s30_s25 }
   0x4   :  { %p888_p0 = scmp.ne.s32.totalorder %s30_s25, %s887_s26  ;;  %p893_p2 = scmp.lt.s32.totalorder %s887_s26, %s887_s26 }
   0x6   :  { %p894_p3 = por %p893_p2, %p892_p1 }
   0x8   :  { %p895_p4 = pnand %p894_p3, %p888_p0 }
   0xa   :  { %898 = shalt.err (!%p895_p4)
}
   0xb   :  { %s924_s27 = smov 64   ;;  %s925_s28 = smov 4  }
   0xc   :  { %35 = dma.hbm_to_vmem [thread:$0]  %s1047_s5, 1024, %s30_s25, [#allocation3], %s924_s27, %s924_s27, %s925_s28  }
   0xd   :  { %919 = dma.done.wait [#allocation3], 1024  }
   0xe   :  { %920 = vsyncadd [#allocation3], 4294966272  ;;  %v765_v0 = vld [vmem:[%s1043_s1 + $0x8] sm:$0xff]   ;;  %v766_v1 = vld [vmem:[%s1043_s1] sm:$0xff]   ;;  %vm77_vm0 = vcmask 261120  }
   0xf   :  { %699 = vmatprep.subr.bf16.mxu0 %v765_v0  ;;  %v42_v2 = vld [vmem:[%s1042_s0] sm:$0xff]  ;;  %v43_v3 = vld [vmem:[%s1042_s0 + $0x8] sm:$0xff]  ;;  %v44_v5 = vld [vmem:[%s1042_s0 + $0x10] sm:$0xff] }
  0x10   :  { %700 = vmatpush3.bf16.msra.mxu0 %v765_v0  ;;  %v50_v4 = vpack.c.bf16 %v43_v3, %v42_v2  ;;  %v45_v6 = vld [vmem:[%s1042_s0 + $0x18] sm:$0xff]  ;;  %v46_v7 = vld [vmem:[%s1042_s0 + $0x20] sm:$0xff]  ;;  %v47_v8 = vld [vmem:[%s1042_s0 + $0x28] sm:$0xff] }
  0x11   :  { %701 = vmatprep.subr.bf16.mxu0 %v766_v1  ;;  %v51_v9 = vpack.c.bf16 %v45_v6, %v44_v5  ;;  %v52_v10 = vpack.c.bf16 %v47_v8, %v46_v7  ;;  %v48_v11 = vld [vmem:[%s1042_s0 + $0x30] sm:$0xff]  ;;  %v49_v12 = vld [vmem:[%s1042_s0 + $0x38] sm:$0xff]  ;;  %v769_v16 = vld [vmem:[%s1045_s3 + $0x28] sm:$0xff]  }
  0x12   :  { %703 = vmatprep.mubr.msk.bf16.mxu0 %vm77_vm0, %v50_v4  ;;  %v53_v13 = vpack.c.bf16 %v49_v12, %v48_v11  ;;  %v767_v14 = vld [vmem:[%s1045_s3 + $0x38] sm:$0xff]   ;;  %v768_v15 = vld [vmem:[%s1045_s3 + $0x30] sm:$0xff]   ;;  %v770_v17 = vld [vmem:[%s1045_s3 + $0x20] sm:$0xff]  }
  0x13   :  { %711 = vmatprep.subr.bf16.mxu1 %v767_v14  ;;  %v771_v18 = vld [vmem:[%s1045_s3 + $0x18] sm:$0xff]   ;;  %v772_v19 = vld [vmem:[%s1045_s3 + $0x10] sm:$0xff]   ;;  %v773_v20 = vld [vmem:[%s1045_s3 + $0x8] sm:$0xff]  }
  0x14   :  { %702 = vmatpush3.bf16.msra.mxu0 %v766_v1  ;;  %712 = vmatpush3.bf16.msra.mxu1 %v767_v14  ;;  %v774_v21 = vld [vmem:[%s1045_s3] sm:$0xff]   ;;  %v775_v11 = vld [vmem:[#allocation2 + $0x38] sm:$0xff]   ;;  %v776_v12 = vld [vmem:[#allocation2 + $0x30] sm:$0xff]  }
  0x15   :  { %713 = vmatprep.subr.bf16.mxu1 %v768_v15  ;;  %v628_v22 = vld [vmem:[%s1044_s2] ss:$0 sm:$0xff]  ;;  %735 = vmatprep.subr.bf16.mxu0 %v775_v11 }
  0x16   :  { %v778_v14 = vld [vmem:[#allocation2 + $0x20] sm:$0xff]  }
  0x17   :  { %704 = vmatmul.mubr.msk.bf16.vlgmr.msra.gmra.mxu0 %vm77_vm0, %v51_v9 }
  0x18   :  { %707 = vmatprep.mubr.msk.bf16.mxu0 %vm77_vm0, %v52_v10  ;;  %714 = vmatpush3.bf16.msra.mxu1 %v768_v15  ;;  %v779_v15 = vld [vmem:[#allocation2 + $0x18] sm:$0xff]  }
  0x19   :  { %715 = vmatprep.subr.bf16.mxu1 %v769_v16  ;;  %736 = vmatpush3.bf16.msra.mxu0 %v775_v11 }
  0x1a   :  { %737 = vmatprep.subr.bf16.mxu0 %v776_v12 }
  0x1c   :  { %716 = vmatpush3.bf16.msra.mxu1 %v769_v16  ;;  %v780_v16 = vld [vmem:[#allocation2 + $0x10] sm:$0xff]  }
  0x1d   :  { %717 = vmatprep.subr.bf16.mxu1 %v770_v17  ;;  %738 = vmatpush3.bf16.msra.mxu0 %v776_v12 }
  0x1f   :  { %708 = vmatmul.mubr.msk.bf16.gmra.mxu0 %vm77_vm0, %v53_v13  ;;  %v777_v13 = vld [vmem:[#allocation2 + $0x28] sm:$0xff]  }
  0x20   :  { %718 = vmatpush3.bf16.msra.mxu1 %v770_v17  ;;  %739 = vmatprep.subr.bf16.mxu0 %v777_v13  ;;  %v781_v17 = vld [vmem:[#allocation2 + $0x8] sm:$0xff]  }
  0x21   :  { %719 = vmatprep.subr.bf16.mxu1 %v771_v18  ;;  %740 = vmatpush3.bf16.msra.mxu0 %v777_v13 }
  0x22   :  { %741 = vmatprep.subr.bf16.mxu0 %v778_v14 }
  0x24   :  { %720 = vmatpush3.bf16.msra.mxu1 %v771_v18  ;;  %v782_v18 = vld [vmem:[#allocation2] sm:$0xff]  }
  0x25   :  { %721 = vmatprep.subr.bf16.mxu1 %v772_v19  ;;  %742 = vmatpush3.bf16.msra.mxu0 %v778_v14 }
  0x26   :  { %743 = vmatprep.subr.bf16.mxu0 %v779_v15 }
  0x28   :  { %722 = vmatpush3.bf16.msra.mxu1 %v772_v19  ;;  %v643_v19 = vld [vmem:[%s1046_s4] ss:$0 sm:$0xff] }
  0x29   :  { %723 = vmatprep.subr.bf16.mxu1 %v773_v20  ;;  %744 = vmatpush3.bf16.msra.mxu0 %v779_v15 }
  0x2a   :  { %745 = vmatprep.subr.bf16.mxu0 %v780_v16 }
  0x2c   :  { %724 = vmatpush3.bf16.msra.mxu1 %v773_v20 }
  0x2d   :  { %725 = vmatprep.subr.bf16.mxu1 %v774_v21  ;;  %746 = vmatpush3.bf16.msra.mxu0 %v780_v16 }
  0x2e   :  { %747 = vmatprep.subr.bf16.mxu0 %v781_v17 }
  0x30   :  { %726 = vmatpush3.bf16.msra.mxu1 %v774_v21 }
  0x31   :  { %748 = vmatpush3.bf16.msra.mxu0 %v781_v17 }
  0x32   :  { %749 = vmatprep.subr.bf16.mxu0 %v782_v18 }
  0x35   :  { %750 = vmatpush3.bf16.msra.mxu0 %v782_v18 }
  0xd7   :  { %v705_v23 = vpop.f32.mrf.mxu0 }
  0xd8   :  { %v133_v24 = vadd.f32 %v705_v23, %v628_v22 }
  0xd9   :  { %v124_v25 = vpop.f32.mrf.mxu0 }
  0xda   :  { %v125_v26 = vadd.f32 %v628_v22, %v124_v25  ;;  %v637_v27 = vmul.f32 -1.442695, %v133_v24 }
  0xdb   :  { %v706_v28 = vpop.f32.mrf.mxu0 }
  0xdc   :  { %v635_v29 = vmul.f32 -1.442695, %v125_v26  ;;  %v136_v30 = vadd.f32 %v706_v28, %v628_v22 }
  0xdd   :  { %v127_v31 = vpop.f32.mrf.mxu0 }
  0xde   :  { %783 = vpow2.f32 %v635_v29  ;;  %v638_v32 = vmul.f32 -1.442695, %v136_v30  ;;  %v128_v33 = vadd.f32 %v628_v22, %v127_v31 }
  0xdf   :  { %785 = vpow2.f32 %v637_v27  ;;  %v709_v34 = vpop.f32.mrf.mxu0 }
  0xe0   :  { %787 = vpow2.f32 %v638_v32  ;;  %v636_v35 = vmul.f32 -1.442695, %v128_v33  ;;  %v149_v36 = vadd.f32 %v709_v34, %v628_v22 }
  0xe1   :  { %v140_v37 = vpop.f32.mrf.mxu0 }
  0xe2   :  { %789 = vpow2.f32 %v636_v35  ;;  %v141_v38 = vadd.f32 %v628_v22, %v140_v37  ;;  %v641_v39 = vmul.f32 -1.442695, %v149_v36 }
  0xe3   :  { %v710_v40 = vpop.f32.mrf.mxu0 }
  0xe4   :  { %v639_v41 = vmul.f32 -1.442695, %v141_v38  ;;  %v152_v42 = vadd.f32 %v710_v40, %v628_v22 }
  0xe5   :  { %v143_v43 = vpop.f32.mrf.mxu0 }
  0xe6   :  { %791 = vpow2.f32 %v639_v41  ;;  %v642_v44 = vmul.f32 -1.442695, %v152_v42  ;;  %v144_v45 = vadd.f32 %v628_v22, %v143_v43 }
  0xe7   :  { %793 = vpow2.f32 %v641_v39 }
  0xe8   :  { %795 = vpow2.f32 %v642_v44  ;;  %v640_v46 = vmul.f32 -1.442695, %v144_v45 }
  0xea   :  { %797 = vpow2.f32 %v640_v46 }
  0xeb   :  { %v784_v47 = vpop.eup %783 }
  0xec   :  { %v786_v48 = vpop.eup %785  ;;  %v179_v49 = vadd.f32 1.0, %v784_v47 }
  0xed   :  { %v788_v50 = vpop.eup %787  ;;  %v181_v53 = vadd.f32 1.0, %v786_v48 }
  0xee   :  { %v182_v51 = vadd.f32 1.0, %v788_v50  ;;  %799 = vrcp.f32 %v179_v49 }
  0xef   :  { %v790_v52 = vpop.eup %789 }
  0xf0   :  { %v180_v54 = vadd.f32 1.0, %v790_v52  ;;  %801 = vrcp.f32 %v182_v51 }
  0xf2   :  { %803 = vrcp.f32 %v180_v54 }
  0xf3   :  { %v792_v55 = vpop.eup %791  ;;  %805 = vrcp.f32 %v181_v53 }
  0xf4   :  { %v794_v56 = vpop.eup %793  ;;  %v183_v57 = vadd.f32 1.0, %v792_v55 }
  0xf5   :  { %v796_v58 = vpop.eup %795  ;;  %v185_v61 = vadd.f32 1.0, %v794_v56 }
  0xf6   :  { %v186_v59 = vadd.f32 1.0, %v796_v58  ;;  %807 = vrcp.f32 %v183_v57 }
  0xf7   :  { %v798_v60 = vpop.eup %797 }
  0xf8   :  { %v184_v62 = vadd.f32 1.0, %v798_v60  ;;  %809 = vrcp.f32 %v186_v59 }
  0xfa   :  { %811 = vrcp.f32 %v184_v62 }
  0xfb   :  { %813 = vrcp.f32 %v185_v61  ;;  %v800_v63 = vpop.eup %799 }
  0xfd   :  { %v802_v0 = vpop.eup %801 }
  0xff   :  { %v804_v1 = vpop.eup %803 }
 0x100   :  { %v806_v2 = vpop.eup %805  ;;  %v203_v3 = vpack.c.bf16 %v804_v1, %v800_v63 }
 0x101   :  { %v204_v4 = vpack.c.bf16 %v802_v0, %v806_v2 }
 0x102   :  { %727 = vmatprep.mubr.bf16.mxu1 %v203_v3 }
 0x103   :  { %728 = vmatmul.mubr.bf16.vlgmr.msra.gmra.mxu1 %v204_v4  ;;  %v808_v5 = vpop.eup %807 }
 0x105   :  { %v810_v6 = vpop.eup %809 }
 0x107   :  { %v812_v7 = vpop.eup %811 }
 0x108   :  { %v814_v8 = vpop.eup %813  ;;  %v205_v9 = vpack.c.bf16 %v812_v7, %v808_v5 }
 0x109   :  { %v206_v10 = vpack.c.bf16 %v810_v6, %v814_v8  ;;  %v660_v8 = vld [vmem:[%s1048_s6] ss:$0 sm:$0xff]  ;;  %s926_s6 = smov [#allocation5]  }
 0x10a   :  { %731 = vmatprep.mubr.bf16.mxu1 %v205_v9  ;;  %s616_s19 = sshll.u32 %s926_s6, 4  ;;  %s617_s19 = int_to_ptr.vmem [resolvable:$true] %s616_s19 }
 0x10b   :  { %732 = vmatmul.mubr.bf16.gmra.mxu1 %v206_v10  ;;  %s899_s20 = scalar_lea.vmem %s617_s19, 1024  ;;  %p904_p6 = scmp.lt.s32.totalorder %s617_s19, %s617_s19 }
 0x10c   :  { %p900_p5 = scmp.ne.s32.totalorder %s617_s19, %s899_s20  ;;  %p905_p7 = scmp.lt.s32.totalorder %s899_s20, %s899_s20 }
 0x10e   :  { %p906_p8 = por %p905_p7, %p904_p6 }
 0x110   :  { %p907_p9 = pnand %p906_p8, %p900_p5 }
 0x1c3   :  { %v729_v20 = vpop.f32.mrf.mxu1 }
 0x1c4   :  { %v321_v21 = vadd.f32 %v729_v20, %v643_v19 }
 0x1c5   :  { %v312_v22 = vpop.f32.mrf.mxu1 }
 0x1c6   :  { %v313_v23 = vadd.f32 %v643_v19, %v312_v22  ;;  %v654_v24 = vmul.f32 -1.442695, %v321_v21 }
 0x1c7   :  { %v730_v25 = vpop.f32.mrf.mxu1 }
 0x1c8   :  { %v652_v26 = vmul.f32 -1.442695, %v313_v23  ;;  %v324_v27 = vadd.f32 %v730_v25, %v643_v19 }
 0x1c9   :  { %v315_v28 = vpop.f32.mrf.mxu1 }
 0x1ca   :  { %815 = vpow2.f32 %v652_v26  ;;  %v655_v29 = vmul.f32 -1.442695, %v324_v27  ;;  %v316_v30 = vadd.f32 %v643_v19, %v315_v28 }
 0x1cb   :  { %817 = vpow2.f32 %v654_v24  ;;  %v733_v31 = vpop.f32.mrf.mxu1 }
 0x1cc   :  { %819 = vpow2.f32 %v655_v29  ;;  %v653_v32 = vmul.f32 -1.442695, %v316_v30  ;;  %v337_v33 = vadd.f32 %v733_v31, %v643_v19 }
 0x1cd   :  { %v328_v34 = vpop.f32.mrf.mxu1 }
 0x1ce   :  { %821 = vpow2.f32 %v653_v32  ;;  %v329_v35 = vadd.f32 %v643_v19, %v328_v34  ;;  %v658_v36 = vmul.f32 -1.442695, %v337_v33 }
 0x1cf   :  { %v734_v37 = vpop.f32.mrf.mxu1 }
 0x1d0   :  { %v656_v38 = vmul.f32 -1.442695, %v329_v35  ;;  %v340_v39 = vadd.f32 %v734_v37, %v643_v19 }
 0x1d1   :  { %v331_v40 = vpop.f32.mrf.mxu1 }
 0x1d2   :  { %823 = vpow2.f32 %v656_v38  ;;  %v659_v41 = vmul.f32 -1.442695, %v340_v39  ;;  %v332_v42 = vadd.f32 %v643_v19, %v331_v40 }
 0x1d3   :  { %825 = vpow2.f32 %v658_v36 }
 0x1d4   :  { %827 = vpow2.f32 %v659_v41  ;;  %v657_v43 = vmul.f32 -1.442695, %v332_v42 }
 0x1d6   :  { %829 = vpow2.f32 %v657_v43 }
 0x1d7   :  { %v816_v44 = vpop.eup %815 }
 0x1d8   :  { %v818_v45 = vpop.eup %817  ;;  %v367_v46 = vadd.f32 1.0, %v816_v44 }
 0x1d9   :  { %v820_v47 = vpop.eup %819  ;;  %v369_v50 = vadd.f32 1.0, %v818_v45 }
 0x1da   :  { %v370_v48 = vadd.f32 1.0, %v820_v47  ;;  %831 = vrcp.f32 %v367_v46 }
 0x1db   :  { %v822_v49 = vpop.eup %821 }
 0x1dc   :  { %v368_v51 = vadd.f32 1.0, %v822_v49  ;;  %833 = vrcp.f32 %v370_v48 }
 0x1de   :  { %835 = vrcp.f32 %v368_v51 }
 0x1df   :  { %v824_v52 = vpop.eup %823  ;;  %837 = vrcp.f32 %v369_v50 }
 0x1e0   :  { %v826_v53 = vpop.eup %825  ;;  %v371_v54 = vadd.f32 1.0, %v824_v52 }
 0x1e1   :  { %v828_v55 = vpop.eup %827  ;;  %v373_v58 = vadd.f32 1.0, %v826_v53 }
 0x1e2   :  { %v374_v56 = vadd.f32 1.0, %v828_v55  ;;  %839 = vrcp.f32 %v371_v54 }
 0x1e3   :  { %v830_v57 = vpop.eup %829 }
 0x1e4   :  { %v372_v59 = vadd.f32 1.0, %v830_v57  ;;  %841 = vrcp.f32 %v374_v56 }
 0x1e6   :  { %843 = vrcp.f32 %v372_v59 }
 0x1e7   :  { %845 = vrcp.f32 %v373_v58  ;;  %v832_v60 = vpop.eup %831 }
 0x1e9   :  { %v834_v61 = vpop.eup %833 }
 0x1eb   :  { %v836_v62 = vpop.eup %835 }
 0x1ec   :  { %v838_v63 = vpop.eup %837  ;;  %v391_v0 = vpack.c.bf16 %v836_v62, %v832_v60 }
 0x1ed   :  { %v392_v1 = vpack.c.bf16 %v834_v61, %v838_v63 }
 0x1ee   :  { %751 = vmatprep.mubr.bf16.mxu0 %v391_v0 }
 0x1ef   :  { %752 = vmatmul.mubr.bf16.vlgmr.msra.gmra.mxu0 %v392_v1  ;;  %v840_v2 = vpop.eup %839 }
 0x1f1   :  { %v842_v3 = vpop.eup %841 }
 0x1f3   :  { %v844_v4 = vpop.eup %843 }
 0x1f4   :  { %v846_v5 = vpop.eup %845  ;;  %v393_v6 = vpack.c.bf16 %v844_v4, %v840_v2 }
 0x1f5   :  { %v394_v7 = vpack.c.bf16 %v842_v3, %v846_v5 }
 0x1f6   :  { %755 = vmatprep.mubr.bf16.mxu0 %v393_v6 }
 0x1f7   :  { %756 = vmatmul.mubr.bf16.gmra.mxu0 %v394_v7 }
 0x2af   :  { %v753_v9 = vpop.f32.mrf.mxu0 }
 0x2b0   :  { %v509_v10 = vadd.f32 %v753_v9, %v660_v8 }
 0x2b1   :  { %v500_v11 = vpop.f32.mrf.mxu0 }
 0x2b2   :  { %v501_v12 = vadd.f32 %v660_v8, %v500_v11  ;;  %535 = vmax.xlane.f32.xlu1 %v509_v10 }
 0x2b3   :  { %v754_v13 = vpop.f32.mrf.mxu0 }
 0x2b4   :  { %v512_v14 = vadd.f32 %v754_v13, %v660_v8  ;;  %531 = vmax.xlane.f32.xlu0 %v501_v12 }
 0x2b5   :  { %v503_v15 = vpop.f32.mrf.mxu0 }
 0x2b6   :  { %v504_v16 = vadd.f32 %v660_v8, %v503_v15  ;;  %537 = vmax.xlane.f32.xlu1 %v512_v14 }
 0x2b7   :  { %v757_v17 = vpop.f32.mrf.mxu0 }
 0x2b8   :  { %533 = vmax.xlane.f32.xlu0 %v504_v16  ;;  %v525_v22 = vadd.f32 %v757_v17, %v660_v8 }
 0x2b9   :  { %v516_v18 = vpop.f32.mrf.mxu0 }
 0x2ba   :  { %v517_v19 = vadd.f32 %v660_v8, %v516_v18 }
 0x2bb   :  { %v758_v20 = vpop.f32.mrf.mxu0 }
 0x2bc   :  { %539 = vmax.xlane.f32.xlu0 %v517_v19  ;;  %v528_v24 = vadd.f32 %v758_v20, %v660_v8 }
 0x2bd   :  { %v519_v21 = vpop.f32.mrf.mxu0 }
 0x2be   :  { %v520_v23 = vadd.f32 %v660_v8, %v519_v21 }
 0x2c0   :  { %541 = vmax.xlane.f32.xlu1 %v520_v23  ;;  %543 = vmax.xlane.f32.xlu0 %v525_v22 }
 0x2c4   :  { %545 = vmax.xlane.f32.xlu1 %v528_v24 }
 0x33b   :  { %v536_v25 = vpop.xlane.xlu1 %535 }
 0x33c   :  { %v549_v26 = vsub.f32 %v509_v10, %v536_v25 }
 0x33d   :  { %v532_v27 = vpop.xlane.xlu0 %531 }
 0x33e   :  { %v559_v28 = vmul.f32 1.442695, %v549_v26  ;;  %v547_v29 = vsub.f32 %v501_v12, %v532_v27 }
 0x33f   :  { %v538_v30 = vpop.xlane.xlu1 %537 }
 0x340   :  { %847 = vpow2.f32 %v559_v28  ;;  %v555_v31 = vmul.f32 1.442695, %v547_v29  ;;  %v550_v32 = vsub.f32 %v512_v14, %v538_v30 }
 0x341   :  { %v534_v33 = vpop.xlane.xlu0 %533 }
 0x342   :  { %v561_v34 = vmul.f32 1.442695, %v550_v32  ;;  %v548_v35 = vsub.f32 %v504_v16, %v534_v33  ;;  %849 = vpow2.f32 %v555_v31 }
 0x344   :  { %851 = vpow2.f32 %v561_v34  ;;  %v557_v36 = vmul.f32 1.442695, %v548_v35 }
 0x345   :  { %v540_v37 = vpop.xlane.xlu0 %539 }
 0x346   :  { %v551_v38 = vsub.f32 %v517_v19, %v540_v37  ;;  %853 = vpow2.f32 %v557_v36 }
 0x348   :  { %v563_v39 = vmul.f32 1.442695, %v551_v38 }
 0x349   :  { %v542_v40 = vpop.xlane.xlu1 %541  ;;  %v544_v41 = vpop.xlane.xlu0 %543 }
 0x34a   :  { %855 = vpow2.f32 %v563_v39  ;;  %v552_v42 = vsub.f32 %v520_v23, %v542_v40  ;;  %v553_v43 = vsub.f32 %v525_v22, %v544_v41 }
 0x34c   :  { %v565_v44 = vmul.f32 1.442695, %v552_v42  ;;  %v567_v45 = vmul.f32 1.442695, %v553_v43 }
 0x34d   :  { %v848_v46 = vpop.eup %847  ;;  %v546_v47 = vpop.xlane.xlu1 %545 }
 0x34e   :  { %857 = vpow2.f32 %v565_v44  ;;  %v554_v48 = vsub.f32 %v528_v24, %v546_v47  ;;  %575 = vadd.xlane.f32.xlu0 %v848_v46 }
 0x34f   :  { %859 = vpow2.f32 %v567_v45  ;;  %v850_v49 = vpop.eup %849 }
 0x350   :  { %v569_v50 = vmul.f32 1.442695, %v554_v48 }
 0x351   :  { %v852_v51 = vpop.eup %851 }
 0x352   :  { %861 = vpow2.f32 %v569_v50  ;;  %577 = vadd.xlane.f32.xlu1 %v852_v51  ;;  %571 = vadd.xlane.f32.xlu0 %v850_v49 }
 0x353   :  { %v854_v52 = vpop.eup %853 }
 0x356   :  { %573 = vadd.xlane.f32.xlu1 %v854_v52 }
 0x357   :  { %v856_v53 = vpop.eup %855 }
 0x358   :  { %579 = vadd.xlane.f32.xlu0 %v856_v53 }
 0x35b   :  { %v858_v54 = vpop.eup %857 }
 0x35c   :  { %v860_v55 = vpop.eup %859  ;;  %581 = vadd.xlane.f32.xlu1 %v858_v54 }
 0x35d   :  { %583 = vadd.xlane.f32.xlu0 %v860_v55 }
 0x35f   :  { %v862_v56 = vpop.eup %861 }
 0x360   :  { %585 = vadd.xlane.f32.xlu1 %v862_v56 }
 0x3d7   :  { %v576_v57 = vpop.xlane.xlu0 %575 }
 0x3d8   :  { %863 = vrcp.f32 %v576_v57 }
 0x3db   :  { %v578_v58 = vpop.xlane.xlu1 %577  ;;  %v572_v59 = vpop.xlane.xlu0 %571 }
 0x3dc   :  { %865 = vrcp.f32 %v578_v58 }
 0x3dd   :  { %867 = vrcp.f32 %v572_v59 }
 0x3df   :  { %v574_v60 = vpop.xlane.xlu1 %573 }
 0x3e0   :  { %869 = vrcp.f32 %v574_v60 }
 0x3e1   :  { %v580_v61 = vpop.xlane.xlu0 %579 }
 0x3e2   :  { %871 = vrcp.f32 %v580_v61 }
 0x3e5   :  { %v864_v62 = vpop.eup %863  ;;  %v582_v63 = vpop.xlane.xlu1 %581 }
 0x3e6   :  { %v597_v0 = vmul.f32 %v864_v62, %v848_v46  ;;  %873 = vrcp.f32 %v582_v63  ;;  %v584_v1 = vpop.xlane.xlu0 %583 }
 0x3e7   :  { %875 = vrcp.f32 %v584_v1 }
 0x3e8   :  { %605 = vst [vmem:[#allocation5 + $0x10] sm:$0xff] %v597_v0 }
 0x3e9   :  { %v866_v2 = vpop.eup %865  ;;  %v586_v3 = vpop.xlane.xlu1 %585 }
 0x3ea   :  { %v868_v4 = vpop.eup %867  ;;  %v598_v5 = vmul.f32 %v866_v2, %v852_v51  ;;  %877 = vrcp.f32 %v586_v3 }
 0x3eb   :  { %v595_v6 = vmul.f32 %v868_v4, %v850_v49 }
 0x3ec   :  { %606 = vst [vmem:[#allocation5 + $0x18] sm:$0xff] %v598_v5 }
 0x3ed   :  { %v870_v7 = vpop.eup %869  ;;  %603 = vst [vmem:[#allocation5] sm:$0xff] %v595_v6 }
 0x3ee   :  { %v596_v8 = vmul.f32 %v870_v7, %v854_v52 }
 0x3ef   :  { %v872_v9 = vpop.eup %871 }
 0x3f0   :  { %604 = vst [vmem:[#allocation5 + $0x8] sm:$0xff] %v596_v8  ;;  %v599_v10 = vmul.f32 %v872_v9, %v856_v53 }
 0x3f2   :  { %607 = vst [vmem:[#allocation5 + $0x20] sm:$0xff] %v599_v10 }
 0x3f3   :  { %v874_v11 = vpop.eup %873 }
 0x3f4   :  { %v876_v12 = vpop.eup %875  ;;  %v600_v13 = vmul.f32 %v874_v11, %v858_v54 }
 0x3f5   :  { %v601_v14 = vmul.f32 %v876_v12, %v860_v55 }
 0x3f6   :  { %608 = vst [vmem:[#allocation5 + $0x28] sm:$0xff] %v600_v13 }
 0x3f7   :  { %v878_v15 = vpop.eup %877  ;;  %609 = vst [vmem:[#allocation5 + $0x30] sm:$0xff] %v601_v14 }
 0x3f8   :  { %v602_v16 = vmul.f32 %v878_v15, %v862_v56 }
 0x3fa   :  { %610 = vst [vmem:[#allocation5 + $0x38] sm:$0xff] %v602_v16 }
 0x3fb   :  { %910 = shalt.err (!%p907_p9)
}
 0x3fc   :  { %s927_s21 = smov 128   ;;  %s928_s22 = smov 8  }
 0x3fd   :  { %622 = dma.vmem_to_hbm [thread:$0]  %s617_s19, 1024, %s1049_s7, [#allocation4], %s927_s21, %s927_s21, %s928_s22  }
 0x3fe   :  { %921 = dma.done.wait [#allocation4], 1024  }
 0x3ff   :  { %922 = vsyncadd [#allocation4], 4294966272 }
 0x400   :  { %626 = vsyncpa [#allocation3], 1 }
 0x401   :  { %627 = vsyncpa [#allocation4], 1 }

</bundles_post_ra>
